<compile_context>
chip_gen: v7x
topology: tpu7x:2x2x1
jax: 0.10.0
libtpu: 0.0.40
codegen_flags: <defaults>
</compile_context>

<pallas_src>
import jax
import jax.numpy as jnp
from jax.experimental import pallas as pl
from jax.experimental.pallas import tpu as pltpu


def _round_up(x, m):
    return (x + m - 1) // m * m


def hgn_kernel(item_ref, user_ref, gbias_ref, wi_ref, wu_ref,
               igi_ref, igut_ref, w2_ref, b2_ref, out_ref):
    BtL, d = item_ref.shape
    L = igut_ref.shape[0]
    Bt = BtL // L

    # bf16 streams upcast once; all arithmetic is f32 (v5e VPU has no bf16).
    item2d = item_ref[...].astype(jnp.float32)                      # (Bt*L, d)
    user = user_ref[...].astype(jnp.float32)                        # (Bt, d)

    # ---- feature gate: one (Bt*L, d) x (d, d) MXU pass + (Bt, d) x (d, d) --
    g_item = jnp.dot(item2d, wi_ref[...],
                     preferred_element_type=jnp.float32)            # (Bt*L, d)
    g_user = jnp.dot(user, wu_ref[...],
                     preferred_element_type=jnp.float32)            # (Bt, d)
    item = item2d.reshape(Bt, L, d)          # leading-dim split, tile aligned
    gate = jax.nn.sigmoid(g_item.reshape(Bt, L, d)
                          + g_user[:, None, :] + gbias_ref[...])
    gated = item * gate                                             # (Bt, L, d)

    # ---- instance gate: single lane reduce, L stays on the sublane axis ----
    # (user @ instance_gate_user folded into the same reduce via ig_user^T)
    logits = jnp.sum(gated * igi_ref[...]
                     + user[:, None, :] * igut_ref[...][None, :, :],
                     axis=-1, keepdims=True)                        # (Bt, L, 1)
    score = jax.nn.sigmoid(logits)                                  # (Bt, L, 1)

    union_num = jnp.sum(gated * score, axis=1)                      # (Bt, d)
    denom = jnp.sum(score, axis=1)                                  # (Bt, 1)
    union_out = union_num * pl.reciprocal(denom, approx=True)       # (Bt, d)

    # ---- folded, lane-dense w2 contraction ---------------------------------
    # res = b2 + (user + union + sum_L item) . w2^T, with w2 pre-transposed to
    # (Bt, d, T_pad): d on sublanes, T_pad (multiple of 128) on lanes -> full-
    # lane multiplies, a sublane reduce, and an unmasked (Bt, T_pad) store.
    q = user + union_out + jnp.sum(item, axis=1)                    # (Bt, d)
    w2f = w2_ref[...].astype(jnp.float32)                           # (Bt, d, Tp)
    res = b2_ref[...] + jnp.sum(w2f * q[:, :, None], axis=1)        # (Bt, Tp)

    out_ref[...] = res.astype(out_ref.dtype)


def hgn_forward(item_embs, user_emb, gate_bias, wi_t, wu_t,
                ig_item_row, ig_user_t, w2, b2, *, block_b=512):
    """HGN hot path (for_pred=False branch) in Pallas.

    item_embs   : (B, L, d)   bf16 or f32 (streamed as given)
    user_emb    : (B, d)      f32
    gate_bias   : (1, d)      f32   (bi + bu pre-combined)
    wi_t / wu_t : (d, d)      f32, stored (in, out) i.e. W^T
    ig_item_row : (1, d)      f32
    ig_user_t   : (L, d)      f32   (instance_gate_user transposed)
    w2          : (B, T, d)   bf16 or f32
    b2          : (B, T)      f32
    Returns res : (B, T)      f32
    """
    B, L, d = item_embs.shape
    T = w2.shape[1]

    # ---- lane-dense w2 path: transpose to (B, d, T) and zero-pad T to 128 --
    Tp = _round_up(T, 128)
    w2_dT = jnp.swapaxes(w2, 1, 2)                       # (B, d, T)
    if Tp != T:
        w2_dT = jnp.pad(w2_dT, ((0, 0), (0, 0), (0, Tp - T)))
        b2 = jnp.pad(b2, ((0, 0), (0, Tp - T)))
    # TODO(synk): for production-sized T, gather W2 rows in-kernel (scalar-
    # prefetch of items_to_predict + pl.ANY table / manual DMA) instead of
    # materializing the gathered+transposed w2_dT copy in HBM.

    # ---- batch tile: multiple of 8; keep >= 2 grid steps for v7x megacore --
    B8 = _round_up(B, 8)
    Bt = min(_round_up(block_b, 8), B8)
    if B8 // Bt < 2 and B8 >= 16:
        Bt = _round_up((B8 + 1) // 2, 8)
    B_pad = _round_up(B, Bt)
    pad = B_pad - B
    if pad:
        item_embs = jnp.pad(item_embs, ((0, pad), (0, 0), (0, 0)))
        user_emb = jnp.pad(user_emb, ((0, pad), (0, 0)))
        w2_dT = jnp.pad(w2_dT, ((0, pad), (0, 0), (0, 0)))
        b2 = jnp.pad(b2, ((0, pad), (0, 0)))

    item_flat = item_embs.reshape(B_pad * L, d)          # flat 2D stream

    grid = (B_pad // Bt,)
    const = lambda b: (0, 0)

    # ---- VMEM budget: double-buffered streams + f32 in-kernel intermediates
    it_b = jnp.dtype(item_flat.dtype).itemsize
    w2_b = jnp.dtype(w2_dT.dtype).itemsize
    stream = 2 * (Bt * L * d * it_b + Bt * d * Tp * w2_b
                  + Bt * d * 4 + 2 * Bt * Tp * 4)
    interm = Bt * d * Tp * 4 + 6 * Bt * L * d * 4
    vmem_limit = int(min(64 << 20, max(32 << 20, int(1.4 * (stream + interm)))))

    out = pl.pallas_call(
        hgn_kernel,
        out_shape=jax.ShapeDtypeStruct((B_pad, Tp), jnp.float32),
        grid_spec=pltpu.PrefetchScalarGridSpec(
            num_scalar_prefetch=0,
            grid=grid,
            in_specs=[
                # TODO(synk): if the w2 DMA is still exposed at production T,
                # add pipeline_mode=pl.Buffered(3) on the item/w2 specs.
                pl.BlockSpec((Bt * L, d), lambda b: (b, 0)),      # item (flat, bf16)
                pl.BlockSpec((Bt, d), lambda b: (b, 0)),          # user
                # shared parameters: constant index_map -> stays resident
                pl.BlockSpec((1, d), const),                      # combined gate bias
                pl.BlockSpec((d, d), const),                      # feature_gate_item W^T
                pl.BlockSpec((d, d), const),                      # feature_gate_user W^T
                pl.BlockSpec((1, d), const),                      # instance_gate_item (row)
                pl.BlockSpec((L, d), const),                      # instance_gate_user^T
                pl.BlockSpec((Bt, d, Tp), lambda b: (b, 0, 0)),   # w2^T (lane-dense, bf16)
                pl.BlockSpec((Bt, Tp), lambda b: (b, 0)),         # b2 (padded)
            ],
            out_specs=pl.BlockSpec((Bt, Tp), lambda b: (b, 0)),
        ),
        compiler_params=pltpu.CompilerParams(
            dimension_semantics=("parallel",),
            vmem_limit_bytes=vmem_limit),
    )(item_flat, user_emb, gate_bias, wi_t, wu_t,
      ig_item_row, ig_user_t, w2_dT, b2)
    return out[:B, :T]


def hgn_reference(item_embs, user_emb, wi_t, bi, wu_t, bu,
                  ig_item, ig_user, w2, b2):
    """Pure-JAX reference mirroring the PyTorch forward (for_pred=False)."""
    gate = jax.nn.sigmoid(item_embs @ wi_t + bi
                          + (user_emb @ wu_t + bu)[:, None, :])
    gated_item = item_embs * gate
    instance_score = jax.nn.sigmoid(
        jnp.squeeze(gated_item @ ig_item, axis=-1) + user_emb @ ig_user)
    union_out = jnp.sum(gated_item * instance_score[..., None], axis=1)
    union_out = union_out / jnp.sum(instance_score, axis=1, keepdims=True)
    res = b2 + jnp.einsum("btd,bd->bt", w2, user_emb)
    res = res + jnp.einsum("bd,btd->bt", union_out, w2)
    rel = jnp.einsum("bld,btd->blt", item_embs, w2)
    res = res + jnp.sum(rel, axis=1)
    return res


def xavier_uniform(key, shape):
    fan_in, fan_out = shape[0], shape[1]
    a = (6.0 / (fan_in + fan_out)) ** 0.5
    return jax.random.uniform(key, shape, jnp.float32, -a, a)


if __name__ == "__main__":
    # Small, module-consistent shapes: d=32, L=8, B=2, T=6 candidates/sample.
    num_users, num_items = 10, 20
    d, L, B, T = 32, 8, 2, 6

    keys = jax.random.split(jax.random.PRNGKey(0), 12)

    # Embedding tables (normal(0, 1/d) as in the module init).
    user_table = jax.random.normal(keys[0], (num_users, d), jnp.float32) / d
    item_table = jax.random.normal(keys[1], (num_items, d), jnp.float32) / d
    W2_table = jax.random.normal(keys[2], (num_items, d), jnp.float32) / d
    W2_table = W2_table.at[0].set(0.0)                    # padding_idx=0
    b2_table = jnp.zeros((num_items, 1), jnp.float32)     # zero-initialized

    # feature gates (nn.Linear(d, d)): store weights pre-transposed (in, out).
    wi_t = xavier_uniform(keys[3], (d, d))
    bi = jax.random.uniform(keys[4], (d,), jnp.float32, -0.1, 0.1)
    wu_t = xavier_uniform(keys[5], (d, d))
    bu = jax.random.uniform(keys[6], (d,), jnp.float32, -0.1, 0.1)

    # instance gates (xavier uniform).
    ig_item = xavier_uniform(keys[7], (d, 1))
    ig_user = xavier_uniform(keys[8], (d, L))

    # Inputs.
    item_seq = jax.random.randint(keys[9], (B, L), 1, num_items)
    user_ids = jax.random.randint(keys[10], (B,), 0, num_users)
    items_to_predict = jax.random.randint(keys[11], (B, T), 1, num_items)

    # Deployment-format tables: item/W2 streams are bf16 so the gathered
    # copies written back to HBM (and re-read by the kernel) are half-width.
    item_table_bf16 = item_table.astype(jnp.bfloat16)
    W2_table_bf16 = W2_table.astype(jnp.bfloat16)

    # Embedding gathers (glue, plain JAX).
    item_embs = item_table_bf16[item_seq]                      # (B, L, d) bf16
    user_emb = user_table[user_ids]                            # (B, d)    f32
    w2 = W2_table_bf16[items_to_predict]                       # (B, T, d) bf16
    b2 = jnp.squeeze(b2_table[items_to_predict], axis=-1)      # (B, T)    f32

    # Pre-combined / re-laid-out parameters for the kernel.
    gate_bias = (bi + bu).reshape(1, d)
    ig_item_row = ig_item.reshape(1, d)
    ig_user_t = ig_user.T                                      # (L, d)

    res = hgn_forward(item_embs, user_emb, gate_bias, wi_t, wu_t,
                      ig_item_row, ig_user_t, w2, b2)
    res = jax.block_until_ready(res)

    # Reference on the same bf16-rounded item/W2 values, so the only
    # kernel-vs-reference deltas are fp reassociation (folded w2) and the
    # approx (EUP) reciprocal.
    ref = hgn_reference(item_embs.astype(jnp.float32), user_emb, wi_t, bi,
                        wu_t, bu, ig_item, ig_user,
                        w2.astype(jnp.float32), b2)
    assert res.shape == (B, T)
    assert jnp.allclose(res, ref, atol=2e-4, rtol=2e-4), "mismatch vs reference"

    print("KERNEL_OK")
</pallas_src>

<mosaic_0001>
module attributes {stable_mosaic.version = 11 : i64} {
  func.func @hgn_kernel(%arg0: i32, %arg1: memref<64x32xbf16, #tpu.memory_space<vmem>>, %arg2: memref<8x32xf32, #tpu.memory_space<vmem>>, %arg3: memref<1x32xf32, #tpu.memory_space<vmem>>, %arg4: memref<32x32xf32, #tpu.memory_space<vmem>>, %arg5: memref<32x32xf32, #tpu.memory_space<vmem>>, %arg6: memref<1x32xf32, #tpu.memory_space<vmem>>, %arg7: memref<8x32xf32, #tpu.memory_space<vmem>>, %arg8: memref<8x32x128xbf16, #tpu.memory_space<vmem>>, %arg9: memref<8x128xf32, #tpu.memory_space<vmem>>, %arg10: memref<8x128xf32, #tpu.memory_space<vmem>>) attributes {dimension_semantics = [#tpu.dimension_semantics<parallel>], iteration_bounds = array<i64: 1>, scalar_prefetch = 0 : i64, scratch_operands = 0 : i64, tpu.core_type = #tpu.core_type<tc>, window_params = [{transform_indices = @transform_0, window_bounds = array<i64: 64, 32>}, {transform_indices = @transform_1, window_bounds = array<i64: 8, 32>}, {pipeline_mode = #tpu.pipeline_mode<synchronous>, transform_indices = @transform_2, window_bounds = array<i64: 1, 32>}, {pipeline_mode = #tpu.pipeline_mode<synchronous>, transform_indices = @transform_3, window_bounds = array<i64: 32, 32>}, {pipeline_mode = #tpu.pipeline_mode<synchronous>, transform_indices = @transform_4, window_bounds = array<i64: 32, 32>}, {pipeline_mode = #tpu.pipeline_mode<synchronous>, transform_indices = @transform_5, window_bounds = array<i64: 1, 32>}, {pipeline_mode = #tpu.pipeline_mode<synchronous>, transform_indices = @transform_6, window_bounds = array<i64: 8, 32>}, {transform_indices = @transform_7, window_bounds = array<i64: 8, 32, 128>}, {transform_indices = @transform_8, window_bounds = array<i64: 8, 128>}, {transform_indices = @transform_9, window_bounds = array<i64: 8, 128>}]} {
    %c0 = arith.constant 0 : index
    %c0_0 = arith.constant 0 : index
    %0 = vector.load %arg1[%c0, %c0_0] : memref<64x32xbf16, #tpu.memory_space<vmem>>, vector<64x32xbf16>
    %1 = arith.extf %0 : vector<64x32xbf16> to vector<64x32xf32>
    %c0_1 = arith.constant 0 : index
    %c0_2 = arith.constant 0 : index
    %2 = vector.load %arg2[%c0_1, %c0_2] : memref<8x32xf32, #tpu.memory_space<vmem>>, vector<8x32xf32>
    %c0_3 = arith.constant 0 : index
    %c0_4 = arith.constant 0 : index
    %3 = vector.load %arg4[%c0_3, %c0_4] : memref<32x32xf32, #tpu.memory_space<vmem>>, vector<32x32xf32>
    %cst = arith.constant dense<0.000000e+00> : vector<64x32xf32>
    %4 = tpu.matmul %1, %3, %cst {dimension_numbers = #tpu.dot_dimension_numbers<[1], [0], [0], [1], [0, 0, 1, 1], [], []>} : vector<64x32xf32>, vector<32x32xf32>, vector<64x32xf32> -> vector<64x32xf32>
    %c0_5 = arith.constant 0 : index
    %c0_6 = arith.constant 0 : index
    %5 = vector.load %arg5[%c0_5, %c0_6] : memref<32x32xf32, #tpu.memory_space<vmem>>, vector<32x32xf32>
    %cst_7 = arith.constant dense<0.000000e+00> : vector<8x32xf32>
    %6 = tpu.matmul %2, %5, %cst_7 {dimension_numbers = #tpu.dot_dimension_numbers<[1], [0], [0], [1], [0, 0, 1, 1], [], []>} : vector<8x32xf32>, vector<32x32xf32>, vector<8x32xf32> -> vector<8x32xf32>
    %7 = vector.shape_cast %1 : vector<64x32xf32> to vector<8x8x32xf32>
    %8 = vector.shape_cast %4 : vector<64x32xf32> to vector<8x8x32xf32>
    %9 = vector.shape_cast %6 : vector<8x32xf32> to vector<8x1x32xf32>
    %10 = vector.broadcast %9 : vector<8x1x32xf32> to vector<8x8x32xf32>
    %11 = arith.addf %8, %10 : vector<8x8x32xf32>
    %c0_8 = arith.constant 0 : index
    %c0_9 = arith.constant 0 : index
    %12 = vector.load %arg3[%c0_8, %c0_9] : memref<1x32xf32, #tpu.memory_space<vmem>>, vector<1x32xf32>
    %13 = vector.shape_cast %12 : vector<1x32xf32> to vector<1x1x32xf32>
    %14 = vector.broadcast %13 : vector<1x1x32xf32> to vector<8x8x32xf32>
    %15 = arith.addf %11, %14 : vector<8x8x32xf32>
    %16 = arith.negf %15 : vector<8x8x32xf32>
    %17 = math.exp %16 : vector<8x8x32xf32>
    %cst_10 = arith.constant 1.000000e+00 : f32
    %18 = vector.broadcast %cst_10 : f32 to vector<8x8x32xf32>
    %19 = arith.addf %18, %17 : vector<8x8x32xf32>
    %20 = arith.divf %18, %19 : vector<8x8x32xf32>
    %21 = arith.mulf %7, %20 : vector<8x8x32xf32>
    %c0_11 = arith.constant 0 : index
    %c0_12 = arith.constant 0 : index
    %22 = vector.load %arg6[%c0_11, %c0_12] : memref<1x32xf32, #tpu.memory_space<vmem>>, vector<1x32xf32>
    %23 = vector.shape_cast %22 : vector<1x32xf32> to vector<1x1x32xf32>
    %24 = vector.broadcast %23 : vector<1x1x32xf32> to vector<8x8x32xf32>
    %25 = arith.mulf %21, %24 : vector<8x8x32xf32>
    %26 = vector.shape_cast %2 : vector<8x32xf32> to vector<8x1x32xf32>
    %c0_13 = arith.constant 0 : index
    %c0_14 = arith.constant 0 : index
    %27 = vector.load %arg7[%c0_13, %c0_14] : memref<8x32xf32, #tpu.memory_space<vmem>>, vector<8x32xf32>
    %28 = vector.shape_cast %27 : vector<8x32xf32> to vector<1x8x32xf32>
    %29 = vector.broadcast %26 : vector<8x1x32xf32> to vector<8x8x32xf32>
    %30 = vector.broadcast %28 : vector<1x8x32xf32> to vector<8x8x32xf32>
    %31 = arith.mulf %29, %30 : vector<8x8x32xf32>
    %32 = arith.addf %25, %31 : vector<8x8x32xf32>
    %cst_15 = arith.constant dense<0.000000e+00> : vector<8x8xf32>
    %33 = vector.multi_reduction <add>, %32, %cst_15 [2] : vector<8x8x32xf32> to vector<8x8xf32>
    %34 = vector.shape_cast %33 : vector<8x8xf32> to vector<8x8x1xf32>
    %35 = arith.negf %34 : vector<8x8x1xf32>
    %36 = math.exp %35 : vector<8x8x1xf32>
    %cst_16 = arith.constant 1.000000e+00 : f32
    %37 = vector.broadcast %cst_16 : f32 to vector<8x8x1xf32>
    %38 = arith.addf %37, %36 : vector<8x8x1xf32>
    %39 = arith.divf %37, %38 : vector<8x8x1xf32>
    %40 = vector.broadcast %39 : vector<8x8x1xf32> to vector<8x8x32xf32>
    %41 = arith.mulf %21, %40 : vector<8x8x32xf32>
    %cst_17 = arith.constant dense<0.000000e+00> : vector<8x32xf32>
    %42 = vector.multi_reduction <add>, %41, %cst_17 [1] : vector<8x8x32xf32> to vector<8x32xf32>
    %cst_18 = arith.constant dense<0.000000e+00> : vector<8x1xf32>
    %43 = vector.multi_reduction <add>, %39, %cst_18 [1] : vector<8x8x1xf32> to vector<8x1xf32>
    %44 = tpu.reciprocal %43 {approx = true} : vector<8x1xf32> -> vector<8x1xf32>
    %45 = vector.broadcast %44 : vector<8x1xf32> to vector<8x32xf32>
    %46 = arith.mulf %42, %45 : vector<8x32xf32>
    %47 = arith.addf %2, %46 : vector<8x32xf32>
    %cst_19 = arith.constant dense<0.000000e+00> : vector<8x32xf32>
    %48 = vector.multi_reduction <add>, %7, %cst_19 [1] : vector<8x8x32xf32> to vector<8x32xf32>
    %49 = arith.addf %47, %48 : vector<8x32xf32>
    %c0_20 = arith.constant 0 : index
    %c0_21 = arith.constant 0 : index
    %c0_22 = arith.constant 0 : index
    %50 = vector.load %arg8[%c0_20, %c0_21, %c0_22] : memref<8x32x128xbf16, #tpu.memory_space<vmem>>, vector<8x32x128xbf16>
    %51 = arith.extf %50 : vector<8x32x128xbf16> to vector<8x32x128xf32>
    %c0_23 = arith.constant 0 : index
    %c0_24 = arith.constant 0 : index
    %52 = vector.load %arg9[%c0_23, %c0_24] : memref<8x128xf32, #tpu.memory_space<vmem>>, vector<8x128xf32>
    %53 = vector.shape_cast %49 : vector<8x32xf32> to vector<8x32x1xf32>
    %54 = vector.broadcast %53 : vector<8x32x1xf32> to vector<8x32x128xf32>
    %55 = arith.mulf %51, %54 : vector<8x32x128xf32>
    %cst_25 = arith.constant dense<0.000000e+00> : vector<8x128xf32>
    %56 = vector.multi_reduction <add>, %55, %cst_25 [1] : vector<8x32x128xf32> to vector<8x128xf32>
    %57 = arith.addf %52, %56 : vector<8x128xf32>
    %c0_26 = arith.constant 0 : index
    %c0_27 = arith.constant 0 : index
    %58 = vector.load %arg10[%c0_26, %c0_27] : memref<8x128xf32, #tpu.memory_space<vmem>>, vector<8x128xf32>
    tpu.vector_store %arg10[%c0_26, %c0_27], %57 {strides = array<i32>} : memref<8x128xf32, #tpu.memory_space<vmem>>, vector<8x128xf32>,
    return
  }
  func.func @transform_0(%arg0: i32) -> (i32, i32) {
    %c0_i32 = arith.constant 0 : i32
    %c0_i32_0 = arith.constant 0 : i32
    return %arg0, %c0_i32 : i32, i32
  }
  func.func @transform_1(%arg0: i32) -> (i32, i32) {
    %c0_i32 = arith.constant 0 : i32
    %c0_i32_0 = arith.constant 0 : i32
    return %arg0, %c0_i32 : i32, i32
  }
  func.func @transform_2(%arg0: i32) -> (i32, i32) {
    %c0_i32 = arith.constant 0 : i32
    %c0_i32_0 = arith.constant 0 : i32
    %c0_i32_1 = arith.constant 0 : i32
    return %c0_i32, %c0_i32_0 : i32, i32
  }
  func.func @transform_3(%arg0: i32) -> (i32, i32) {
    %c0_i32 = arith.constant 0 : i32
    %c0_i32_0 = arith.constant 0 : i32
    %c0_i32_1 = arith.constant 0 : i32
    return %c0_i32, %c0_i32_0 : i32, i32
  }
  func.func @transform_4(%arg0: i32) -> (i32, i32) {
    %c0_i32 = arith.constant 0 : i32
    %c0_i32_0 = arith.constant 0 : i32
    %c0_i32_1 = arith.constant 0 : i32
    return %c0_i32, %c0_i32_0 : i32, i32
  }
  func.func @transform_5(%arg0: i32) -> (i32, i32) {
    %c0_i32 = arith.constant 0 : i32
    %c0_i32_0 = arith.constant 0 : i32
    %c0_i32_1 = arith.constant 0 : i32
    return %c0_i32, %c0_i32_0 : i32, i32
  }
  func.func @transform_6(%arg0: i32) -> (i32, i32) {
    %c0_i32 = arith.constant 0 : i32
    %c0_i32_0 = arith.constant 0 : i32
    %c0_i32_1 = arith.constant 0 : i32
    return %c0_i32, %c0_i32_0 : i32, i32
  }
  func.func @transform_7(%arg0: i32) -> (i32, i32, i32) {
    %c0_i32 = arith.constant 0 : i32
    %c0_i32_0 = arith.constant 0 : i32
    %c0_i32_1 = arith.constant 0 : i32
    return %arg0, %c0_i32, %c0_i32_0 : i32, i32, i32
  }
  func.func @transform_8(%arg0: i32) -> (i32, i32) {
    %c0_i32 = arith.constant 0 : i32
    %c0_i32_0 = arith.constant 0 : i32
    return %arg0, %c0_i32 : i32, i32
  }
  func.func @transform_9(%arg0: i32) -> (i32, i32) {
    %c0_i32 = arith.constant 0 : i32
    %c0_i32_0 = arith.constant 0 : i32
    return %arg0, %c0_i32 : i32, i32
  }
}

</mosaic_0001>

<bundles_post_ra>
// kernel: tpu_custom_call.1
= control target key start
LH: loop header
LB: loop body
LE: loop exit
PB: predicated region body
PF: predicated region fallthrough
CT: control target
= control target key end

     0   :  { %14 = vsyncpa [#allocation3], 0  ;;  %s1954_s0 = inlined_call_operand.vmem [shape: bf16[64,32], index: 0, kind: input, shape index: {}]   ;;  %s1955_s1 = inlined_call_operand.vmem [shape: f32[8,32], index: 1, kind: input, shape index: {}]   ;;  %s1956_s2 = inlined_call_operand.vmem [shape: f32[1,32], index: 2, kind: input, shape index: {}]   ;;  %s1957_s3 = inlined_call_operand.vmem [shape: f32[32,32], index: 3, kind: input, shape index: {}]   ;;  %s1958_s4 = inlined_call_operand.hbm [shape: f32[32,32], index: 4, kind: input, shape index: {}]   ;;  %s1959_s5 = inlined_call_operand.vmem [shape: f32[1,32], index: 5, kind: input, shape index: {}]   ;;  %s1960_s6 = inlined_call_operand.vmem [shape: f32[8,32], index: 6, kind: input, shape index: {}]   ;;  %s1961_s7 = inlined_call_operand.hbm [shape: bf16[8,32,128], index: 7, kind: input, shape index: {}]   ;;  %s1962_s8 = inlined_call_operand.vmem [shape: f32[8,128], index: 8, kind: input, shape index: {}]   ;;  %s1963_s9 = inlined_call_operand.hbm [shape: f32[8,128], index: 9, kind: output, shape index: {}]  }
   0x1   :  { %15 = vsyncpa [#allocation6], 0 }
   0x2   :  { %16 = vsyncpa [#allocation4], 0  ;;  %s1582_s30 = smov [#allocation2]   ;;  %s1510_s13 = scalar_lea.hbm %s1958_s4, 512 }
   0x3   :  { %s30_s10 = sshll.u32 %s1582_s30, 4  ;;  %p1511_p0 = scmp.ne.s32.totalorder %s1958_s4, %s1510_s13  ;;  %s31_s10 = int_to_ptr.vmem [resolvable:$true] %s30_s10 }
   0x4   :  { %p1514_p1 = scmp.lt.u32.totalorder %s1510_s13, %s1958_s4 }
   0x6   :  { %p1516_p2 = pnand %p1514_p1, %p1511_p0 }
   0x8   :  { %1519 = shalt.err (!%p1516_p2)
}
   0x9   :  { %s1520_s18 = scalar_lea.vmem %s31_s10, 512  ;;  %p1525_p4 = scmp.lt.s32.totalorder %s31_s10, %s31_s10 }
   0xa   :  { %p1521_p3 = scmp.ne.s32.totalorder %s31_s10, %s1520_s18  ;;  %p1526_p5 = scmp.lt.s32.totalorder %s1520_s18, %s1520_s18 }
   0xc   :  { %p1527_p6 = por %p1526_p5, %p1525_p4 }
   0xe   :  { %p1528_p7 = pnand %p1527_p6, %p1521_p3 }
  0x10   :  { %1531 = shalt.err (!%p1528_p7)
}
  0x11   :  { %s1583_s19 = smov 128   ;;  %s1584_s20 = smov 8  }
  0x12   :  { %36 = dma.hbm_to_vmem [thread:$0]  %s1958_s4, 512, %s31_s10, [#allocation3], %s1583_s19, %s1583_s19, %s1584_s20  }
  0x13   :  { %s1585_s23 = smov [#allocation5]   ;;  %s1532_s27 = scalar_lea.hbm %s1961_s7, 2048 }
  0x14   :  { %s46_s24 = sshll.u32 %s1585_s23, 4  ;;  %p1533_p8 = scmp.ne.s32.totalorder %s1961_s7, %s1532_s27  ;;  %s47_s24 = int_to_ptr.vmem [resolvable:$true] %s46_s24 }
  0x15   :  { %p1536_p9 = scmp.lt.u32.totalorder %s1532_s27, %s1961_s7 }
  0x17   :  { %p1538_p10 = pnand %p1536_p9, %p1533_p8 }
  0x19   :  { %1541 = shalt.err (!%p1538_p10)
}
  0x1a   :  { %s1542_s12 = scalar_lea.vmem %s47_s24, 2048  ;;  %p1547_p12 = scmp.lt.s32.totalorder %s47_s24, %s47_s24 }
  0x1b   :  { %p1543_p11 = scmp.ne.s32.totalorder %s47_s24, %s1542_s12  ;;  %p1548_p13 = scmp.lt.s32.totalorder %s1542_s12, %s1542_s12 }
  0x1d   :  { %p1549_p0 = por %p1548_p13, %p1547_p12 }
  0x1f   :  { %p1550_p1 = pnand %p1549_p0, %p1543_p11 }
  0x21   :  { %1553 = shalt.err (!%p1550_p1)
}
  0x22   :  { %s1586_s4 = smov 64   ;;  %s1587_s10 = smov 4  }
  0x23   :  { %52 = dma.hbm_to_vmem [thread:$0]  %s1961_s7, 2048, %s47_s24, [#allocation6], %s1586_s4, %s1586_s4, %s1587_s10  }
  0x24   :  { %1576 = dma.done.wait [#allocation3], 512  }
  0x25   :  { %1577 = vsyncadd [#allocation3], 4294966784 }
  0x26   :  { %1578 = dma.done.wait [#allocation6], 2048  }
  0x27   :  { %1579 = vsyncadd [#allocation6], 4294965248  ;;  %v1588_v0 = vmov 0.0|0.0   ;;  %vm1589_vm0 = vmmov 0   ;;  %v1590_v1 = vmov 0.0   ;;  %v78_v2 = vld [vmem:[%s1957_s3] sm:$0xff]  ;;  %v294_v29 = vlaneseq }
  0x28   :  { %1412 = vmatprep.subr.bf16.mxu1 %v1588_v0  ;;  %1401 = vmatprep.mubr.msk.f32.mxu1 %vm1589_vm0, %v1590_v1  ;;  %v79_v3 = vld [vmem:[%s1957_s3 + $0x8] sm:$0xff]  ;;  %v212_v4 = vld [vmem:[#allocation2] sm:$0xff]  ;;  %v80_v7 = vld [vmem:[%s1957_s3 + $0x10] sm:$0xff]  ;;  %vm82_vm1 = vcmask 261120   ;;  %v1591_v27 = vmov 1966171168  }
  0x29   :  { %v1404_v5 = vpack.c.bf16 %v79_v3, %v78_v2  ;;  %v213_v6 = vld [vmem:[#allocation2 + $0x8] sm:$0xff]  ;;  %v81_v8 = vld [vmem:[%s1957_s3 + $0x18] sm:$0xff]  ;;  %v214_v11 = vld [vmem:[#allocation2 + $0x10] sm:$0xff]  ;;  %v292_v28 = vunpack.c.l.s4 %v1591_v27  ;;  %v1730_v31 = vshrl.u32 %v294_v29, 7  ;;  %vm787_vm2 = vcmask 1041409   ;;  %s1592_s10 = smov [#allocation7]  }
  0x2a   :  { %v1413_v9 = vpack.c.bf16 %v213_v6, %v212_v4  ;;  %v1408_v10 = vpack.c.bf16 %v81_v8, %v80_v7  ;;  %v215_v12 = vld [vmem:[#allocation2 + $0x18] sm:$0xff]  ;;  %v1259_v13 = vld [vmem:[%s1954_s0] sm:$0xff]   ;;  %v1338_v16 = vld [vmem:[%s1954_s0 + $0x8] sm:$0xff]   ;;  %vm789_vm3 = vcmask 1042434   ;;  %vm791_vm4 = vcmask 1043459   ;;  %s1221_s13 = sshll.u32 %s1592_s10, 4  ;;  %s1222_s13 = int_to_ptr.vmem [resolvable:$true] %s1221_s13 }
  0x2b   :  { %1405 = vmatprep.subr.bf16.mxu0 %v1404_v5  ;;  %v1682_v14 = vunpack.c.l.bf16 %v1259_v13  ;;  %v1416_v15 = vpack.c.bf16 %v215_v12, %v214_v11  ;;  %v1689_v17 = vunpack.c.h.bf16 %v1259_v13  ;;  %v1694_v18 = vld [vmem:[%s1955_s1] sm:$0xff]  ;;  %v1696_v19 = vunpack.c.l.bf16 %v1338_v16  ;;  %v1339_v20 = vld [vmem:[%s1954_s0 + $0x10] sm:$0xff]   ;;  %v1340_v23 = vld [vmem:[%s1954_s0 + $0x18] sm:$0xff]   ;;  %s1554_s14 = scalar_lea.vmem %s1222_s13, 128  ;;  %p1559_p3 = scmp.lt.s32.totalorder %s1222_s13, %s1222_s13 }
  0x2c   :  { %1414 = vmatpush3.bf16.msra.mxu1 %v1413_v9  ;;  %1407 = vmatpush3.bf16.msra.mxu0 %v1404_v5  ;;  %v1705_v21 = vunpack.c.h.bf16 %v1338_v16  ;;  %v1709_v22 = vunpack.c.l.bf16 %v1339_v20  ;;  %v1716_v24 = vunpack.c.h.bf16 %v1339_v20  ;;  %v1720_v25 = vunpack.c.l.bf16 %v1340_v23  ;;  %v1240_v49 = vld [vmem:[%s1956_s2] ss:$0 sm:$0xff]  ;;  %p1555_p2 = scmp.ne.s32.totalorder %s1222_s13, %s1554_s14  ;;  %p1560_p4 = scmp.lt.s32.totalorder %s1554_s14, %s1554_s14 }
  0x2d   :  { %1415 = vmatprep.subr.bf16.mxu1 %v1588_v0  ;;  %1409 = vmatprep.subr.bf16.mxu0 %v1408_v10  ;;  %v1724_v26 = vunpack.c.h.bf16 %v1340_v23  ;;  %v293_v30 = vunpack.c.0.s8 %v292_v28  ;;  %v1737_v38 = vsub.s32 0, %v1730_v31  ;;  %vm793_vm5 = vcmask 1044484  }
  0x2e   :  { %1381 = vmatprep.mubr.msk.f32.mxu0 %vm82_vm1, %v1682_v14  ;;  %vm795_vm6 = vcmask 1045509   ;;  %vm797_vm7 = vcmask 1046534   ;;  %vm799_vm8 = vcmask 1047559   ;;  %p1561_p5 = por %p1560_p4, %p1559_p3 }
  0x2f   :  { %v1733_v32 = vsub.s32 %v293_v30, %v1730_v31 }
  0x30   :  { %1417 = vmatpush3.bf16.msra.mxu1 %v1416_v15  ;;  %1411 = vmatpush3.bf16.msra.mxu0 %v1408_v10  ;;  %p1562_p6 = pnand %p1561_p5, %p1555_p2 }
  0x33   :  { %1402 = vmatmul.mubr.msk.f32.vlgmr.msra.gmra.mrb[0].mxu1 %vm82_vm1, %v1694_v18  ;;  %1382 = vmatmul.mubr.msk.f32.vlgmr.msra.gmra.mrb[0].mxu0 %vm82_vm1, %v1689_v17 }
  0x34   :  { %1384 = vmatprep.mubr.msk.f32.mxu0 %vm82_vm1, %v1696_v19 }
  0x37   :  { %1385 = vmatmul.mubr.msk.f32.gmra.mrb[2].mxu0 %vm82_vm1, %v1705_v21 }
  0x38   :  { %1387 = vmatprep.mubr.msk.f32.mxu0 %vm82_vm1, %v1709_v22 }
  0x3b   :  { %1388 = vmatmul.mubr.msk.f32.gmra.mrb[4].mxu0 %vm82_vm1, %v1716_v24 }
  0x3c   :  { %1390 = vmatprep.mubr.msk.f32.mxu0 %vm82_vm1, %v1720_v25 }
  0x3f   :  { %1391 = vmatmul.mubr.msk.f32.gmra.mrb[6].mxu0 %vm82_vm1, %v1724_v26 }
 0x106   :  { %v285_v33 = vpop.f32.mrb[0].mxu1  ;;  %v1383_v34 = vpop.f32.mrb[0].mxu0 }
 0x107   :  { %v290_v35 = vcombine.high %v285_v33, %v285_v33  ;;  %v297_v36 = vrot.slane %v285_v33, %v1733_v32  ;;  %v1403_v37 = vpop.f32.mrb[1].mxu1  ;;  %v173_v39 = vpop.f32.mrb[1].mxu0 }
 0x108   :  { %v480_v37 = vrot.slane %v1694_v18, %v1733_v32 }
 0x109   :  { %v304_v40 = vrot.slane %v290_v35, %v1733_v32  ;;  %v305_v41 = vcombine.high %v297_v36, %v297_v36  ;;  %v313_v42 = vrot.slane %v297_v36, %v1733_v32 }
 0x10a   :  { %v1386_v43 = vpop.f32.mrb[2].mxu0 }
 0x10b   :  { %v306_v44 = vcombine.high %v304_v40, %v304_v40  ;;  %v327_v45 = vrot.slane %v305_v41, %v1733_v32  ;;  %v342_v46 = vrot.slane %v313_v42, %v1737_v38  ;;  %v183_v47 = vpop.f32.mrb[3].mxu0  ;;  %v335_v48 = vcombine.high %v313_v42, %v313_v42 }
 0x10c   :  { %v320_v50 = vrot.slane %v304_v40, %v1733_v32  ;;  %v473_v40 = vcombine.high %v1694_v18, %v1694_v18 }
 0x10d   :  { %v346_v51 = vrot.slane %v327_v45, %v1737_v38  ;;  %v379_v52 = vadd.f32 %v342_v46, %v173_v39  ;;  %v337_v53 = vcombine.high %v327_v45, %v327_v45  ;;  %v350_v54 = vrot.slane %v335_v48, %v1737_v38 }
 0x10e   :  { %v1389_v55 = vpop.f32.mrb[4].mxu0  ;;  %v334_v56 = vrot.slane %v306_v44, %v1733_v32  ;;  %v358_v57 = vrot.slane %v320_v50, %v1737_v38  ;;  %v336_v58 = vcombine.high %v320_v50, %v320_v50 }
 0x10f   :  { %v380_v59 = vadd.f32 %v1383_v34, %v346_v51  ;;  %v394_v60 = vadd.f32 %v1240_v49, %v379_v52  ;;  %v354_v61 = vrot.slane %v337_v53, %v1737_v38  ;;  %v381_v62 = vadd.f32 %v350_v54, %v183_v47  ;;  %v193_v63 = vpop.f32.mrb[5].mxu0 }
 0x110   :  { %v362_v0 = vrot.slane %v334_v56, %v1737_v38  ;;  %v383_v1 = vadd.f32 %v358_v57, %v193_v63  ;;  %v338_v2 = vcombine.high %v334_v56, %v334_v56  ;;  %v366_v11 = vrot.slane %v336_v58, %v1737_v38 }
 0x111   :  { %v395_v3 = vadd.f32 %v1240_v49, %v380_v59  ;;  %v1241_v4 = vmul.f32 -1.442695, %v394_v60  ;;  %v382_v5 = vadd.f32 %v1386_v43, %v354_v61  ;;  %v396_v6 = vadd.f32 %v1240_v49, %v381_v62 }
 0x112   :  { %v384_v7 = vadd.f32 %v1389_v55, %v362_v0  ;;  %v398_v8 = vadd.f32 %v1240_v49, %v383_v1  ;;  %v1392_v9 = vpop.f32.mrb[6].mxu0  ;;  %v370_v10 = vrot.slane %v338_v2, %v1737_v38  ;;  %v488_v43 = vcombine.high %v480_v37, %v480_v37  ;;  %v522_v0 = vld [vmem:[%s1960_s6] sm:$0xff] }
 0x113   :  { %v1242_v12 = vmul.f32 -1.442695, %v395_v3  ;;  %1430 = vpow2.f32 %v1241_v4  ;;  %v397_v13 = vadd.f32 %v1240_v49, %v382_v5  ;;  %v1243_v15 = vmul.f32 -1.442695, %v396_v6  ;;  %v203_v16 = vpop.f32.mrb[7].mxu0 }
 0x114   :  { %v399_v20 = vadd.f32 %v1240_v49, %v384_v7  ;;  %v386_v23 = vadd.f32 %v1392_v9, %v370_v10  ;;  %v385_v27 = vadd.f32 %v366_v11, %v203_v16  ;;  %v1245_v29 = vmul.f32 -1.442695, %v398_v8  ;;  %v1249_v4 = vld [vmem:[%s1959_s5] ss:$0 sm:$0xff] }
 0x115   :  { %1432 = vpow2.f32 %v1242_v12  ;;  %v1244_v28 = vmul.f32 -1.442695, %v397_v13  ;;  %v496_v51 = vrot.slane %v480_v37, %v1733_v32  ;;  %v510_v54 = vrot.slane %v488_v43, %v1733_v32 }
 0x116   :  { %1434 = vpow2.f32 %v1243_v15  ;;  %v1246_v30 = vmul.f32 -1.442695, %v399_v20  ;;  %v401_v33 = vadd.f32 %v1240_v49, %v386_v23  ;;  %v400_v34 = vadd.f32 %v1240_v49, %v385_v27 }
 0x117   :  { %1436 = vpow2.f32 %v1244_v28  ;;  %v487_v49 = vrot.slane %v473_v40, %v1733_v32  ;;  %v518_v60 = vcombine.high %v496_v51, %v496_v51  ;;  %v526_v62 = vrot.slane %v496_v51, %v1737_v38 }
 0x118   :  { %1438 = vpow2.f32 %v1246_v30  ;;  %v1248_v35 = vmul.f32 -1.442695, %v401_v33  ;;  %v1247_v36 = vmul.f32 -1.442695, %v400_v34  ;;  %v520_v63 = vcombine.high %v510_v54, %v510_v54 }
 0x119   :  { %1440 = vpow2.f32 %v1245_v29  ;;  %v489_v61 = vcombine.high %v487_v49, %v487_v49  ;;  %v503_v1 = vrot.slane %v487_v49, %v1733_v32  ;;  %v530_v2 = vrot.slane %v510_v54, %v1737_v38 }
 0x11a   :  { %1442 = vpow2.f32 %v1248_v35  ;;  %v534_v5 = vrot.slane %v518_v60, %v1737_v38  ;;  %v563_v8 = vmul.f32 %v526_v62, %v522_v0  ;;  %v538_v9 = vrot.slane %v520_v63, %v1737_v38 }
 0x11b   :  { %1444 = vpow2.f32 %v1247_v36  ;;  %v517_v6 = vrot.slane %v489_v61, %v1733_v32  ;;  %v542_v11 = vrot.slane %v503_v1, %v1737_v38  ;;  %v519_v12 = vcombine.high %v503_v1, %v503_v1 }
 0x11c   :  { %v564_v20 = vmul.f32 %v530_v2, %v522_v0  ;;  %v565_v27 = vmul.f32 %v534_v5, %v522_v0  ;;  %v566_v36 = vmul.f32 %v538_v9, %v522_v0 }
 0x11d   :  { %v1431_v39 = vpop.eup %1430  ;;  %v546_v28 = vrot.slane %v517_v6, %v1737_v38  ;;  %v521_v29 = vcombine.high %v517_v6, %v517_v6  ;;  %v567_v40 = vmul.f32 %v542_v11, %v522_v0 }
 0x11e   :  { %v426_v41 = vadd.f32 1.0, %v1431_v39 }
 0x11f   :  { %v1433_v42 = vpop.eup %1432  ;;  %v568_v51 = vmul.f32 %v546_v28, %v522_v0 }
 0x120   :  { %v1435_v44 = vpop.eup %1434  ;;  %v427_v45 = vadd.f32 1.0, %v1433_v42  ;;  %1446 = vrcp.f32 %v426_v41  ;;  %v550_v42 = vrot.slane %v519_v12, %v1737_v38 }
 0x121   :  { %v1437_v46 = vpop.eup %1436  ;;  %v428_v47 = vadd.f32 1.0, %v1435_v44 }
 0x122   :  { %v1439_v48 = vpop.eup %1438  ;;  %1448 = vrcp.f32 %v427_v45  ;;  %v429_v50 = vadd.f32 1.0, %v1437_v46  ;;  %v569_v61 = vmul.f32 %v550_v42, %v522_v0 }
 0x123   :  { %v1441_v52 = vpop.eup %1440  ;;  %1450 = vrcp.f32 %v428_v47  ;;  %v431_v53 = vadd.f32 1.0, %v1439_v48 }
 0x124   :  { %v1443_v55 = vpop.eup %1442  ;;  %1452 = vrcp.f32 %v429_v50  ;;  %v430_v56 = vadd.f32 1.0, %v1441_v52 }
 0x125   :  { %v1445_v57 = vpop.eup %1444  ;;  %1454 = vrcp.f32 %v431_v53  ;;  %v433_v58 = vadd.f32 1.0, %v1443_v55  ;;  %v554_v53 = vrot.slane %v521_v29, %v1737_v38 }
 0x126   :  { %1456 = vrcp.f32 %v430_v56  ;;  %v432_v59 = vadd.f32 1.0, %v1445_v57 }
 0x127   :  { %1458 = vrcp.f32 %v433_v58  ;;  %v570_v2 = vmul.f32 %v554_v53, %v522_v0  ;;  %v817_v53 = vsel %vm82_vm1, %v1696_v19, 0.0 }
 0x128   :  { %1460 = vrcp.f32 %v432_v59 }
 0x12a   :  { %v1447_v3 = vpop.eup %1446 }
 0x12b   :  { %v1774_v7 = vmul.f32 %v1447_v3, %v1682_v14 }
 0x12c   :  { %v1449_v10 = vpop.eup %1448 }
 0x12d   :  { %v1451_v13 = vpop.eup %1450  ;;  %v465_v15 = vmul.f32 %v1249_v4, %v1774_v7  ;;  %v1780_v16 = vmul.f32 %v1449_v10, %v1689_v17 }
 0x12e   :  { %v1453_v23 = vpop.eup %1452  ;;  %v1783_v32 = vmul.f32 %v1451_v13, %v1696_v19 }
 0x12f   :  { %v1455_v30 = vpop.eup %1454  ;;  %v571_v33 = vadd.f32 %v563_v8, %v465_v15  ;;  %v466_v34 = vmul.f32 %v1249_v4, %v1780_v16  ;;  %v1788_v35 = vmul.f32 %v1453_v23, %v1705_v21 }
 0x130   :  { %v1457_v37 = vpop.eup %1456  ;;  %v467_v39 = vmul.f32 %v1249_v4, %v1783_v32  ;;  %v1792_v41 = vmul.f32 %v1455_v30, %v1716_v24 }
 0x131   :  { %v1459_v43 = vpop.eup %1458  ;;  %v579_v44 = vsel %vm82_vm1, %v571_v33, 0.0  ;;  %v572_v45 = vadd.f32 %v564_v20, %v466_v34  ;;  %v468_v46 = vmul.f32 %v1249_v4, %v1788_v35  ;;  %v1798_v47 = vmul.f32 %v1457_v37, %v1709_v22 }
 0x132   :  { %v1461_v48 = vpop.eup %1460  ;;  %580 = vadd.xlane.f32.xlu0 %v579_v44  ;;  %v573_v49 = vadd.f32 %v565_v27, %v467_v39  ;;  %v470_v56 = vmul.f32 %v1249_v4, %v1792_v41  ;;  %v1808_v57 = vmul.f32 %v1459_v43, %v1724_v26  ;;  %v803_v39 = vsel %vm82_vm1, %v1682_v14, 0.0 }
 0x133   :  { %v469_v50 = vmul.f32 %v1249_v4, %v1798_v47  ;;  %v1802_v52 = vmul.f32 %v1461_v48, %v1720_v25  ;;  %v574_v55 = vadd.f32 %v566_v36, %v468_v46  ;;  %v582_v58 = vsel %vm82_vm1, %v572_v45, 0.0 }
 0x134   :  { %v585_v54 = vsel %vm82_vm1, %v573_v49, 0.0  ;;  %v576_v63 = vadd.f32 %v568_v51, %v470_v56  ;;  %v472_v1 = vmul.f32 %v1249_v4, %v1808_v57  ;;  %v804_v48 = vrot.slane %v803_v39, 4 }
 0x135   :  { %586 = vadd.xlane.f32.xlu1 %v585_v54  ;;  %v575_v59 = vadd.f32 %v567_v40, %v469_v50  ;;  %v471_v60 = vmul.f32 %v1249_v4, %v1802_v52  ;;  %v588_v62 = vsel %vm82_vm1, %v574_v55, 0.0  ;;  %v810_v40 = vsel %vm82_vm1, %v1689_v17, 0.0 }
 0x136   :  { %583 = vadd.xlane.f32.xlu0 %v582_v58  ;;  %v594_v6 = vsel %vm82_vm1, %v576_v63, 0.0  ;;  %v578_v8 = vadd.f32 %v570_v2, %v472_v1  ;;  %v811_v49 = vrot.slane %v810_v40, 4  ;;  %v824_v17 = vsel %vm82_vm1, %v1705_v21, 0.0 }
 0x137   :  { %v591_v3 = vsel %vm82_vm1, %v575_v59, 0.0  ;;  %v577_v5 = vadd.f32 %v569_v61, %v471_v60  ;;  %v831_v54 = vsel %vm82_vm1, %v1709_v22, 0.0  ;;  %v805_v56 = vadd.f32 %v804_v48, %v803_v39 }
 0x138   :  { %v600_v10 = vsel %vm82_vm1, %v578_v8, 0.0  ;;  %v812_v58 = vadd.f32 %v811_v49, %v810_v40  ;;  %v838_v59 = vsel %vm82_vm1, %v1716_v24, 0.0  ;;  %v818_v60 = vrot.slane %v817_v53, 4 }
 0x139   :  { %589 = vadd.xlane.f32.xlu1 %v588_v62  ;;  %v597_v9 = vsel %vm82_vm1, %v577_v5, 0.0  ;;  %v825_v62 = vrot.slane %v824_v17, 4  ;;  %v832_v63 = vrot.slane %v831_v54, 4  ;;  %v839_v2 = vrot.slane %v838_v59, 4 }
 0x13a   :  { %592 = vadd.xlane.f32.xlu0 %v591_v3  ;;  %v806_v5 = vrot.slane %v805_v56, 2  ;;  %v813_v21 = vrot.slane %v812_v58, 2 }
 0x13d   :  { %595 = vadd.xlane.f32.xlu1 %v594_v6  ;;  %v819_v6 = vadd.f32 %v818_v60, %v817_v53 }
 0x13e   :  { %598 = vadd.xlane.f32.xlu0 %v597_v9 }
 0x141   :  { %601 = vadd.xlane.f32.xlu1 %v600_v10 }
 0x1bf   :  { %v581_v11 = vpop.xlane.xlu0 %580 }
 0x1c0   :  { %v1250_v12 = vmul.f32 -1.442695, %v581_v11  ;;  %v826_v11 = vadd.f32 %v825_v62, %v824_v17 }
 0x1c2   :  { %1462 = vpow2.f32 %v1250_v12  ;;  %v587_v4 = vpop.xlane.xlu1 %586  ;;  %v833_v12 = vadd.f32 %v832_v63, %v831_v54 }
 0x1c3   :  { %v1252_v0 = vmul.f32 -1.442695, %v587_v4  ;;  %v584_v13 = vpop.xlane.xlu0 %583 }
 0x1c4   :  { %v1251_v15 = vmul.f32 -1.442695, %v584_v13  ;;  %v845_v13 = vsel %vm82_vm1, %v1720_v25, 0.0 }
 0x1c5   :  { %1464 = vpow2.f32 %v1252_v0  ;;  %v840_v0 = vadd.f32 %v839_v2, %v838_v59  ;;  %v846_v48 = vrot.slane %v845_v13, 4 }
 0x1c6   :  { %1466 = vpow2.f32 %v1251_v15  ;;  %v590_v20 = vpop.xlane.xlu1 %589  ;;  %v852_v15 = vsel %vm82_vm1, %v1724_v26, 0.0 }
 0x1c7   :  { %v1253_v23 = vmul.f32 -1.442695, %v590_v20  ;;  %v593_v27 = vpop.xlane.xlu0 %592  ;;  %v853_v49 = vrot.slane %v852_v15, 4 }
 0x1c8   :  { %v1254_v28 = vmul.f32 -1.442695, %v593_v27  ;;  %v1835_v27 = vadd.f32 %v806_v5, %v805_v56 }
 0x1c9   :  { %1468 = vpow2.f32 %v1253_v23 }
 0x1ca   :  { %1470 = vpow2.f32 %v1254_v28  ;;  %v596_v29 = vpop.xlane.xlu1 %595  ;;  %v808_v54 = vrot.slane %v1835_v27, 1 }
 0x1cb   :  { %v1255_v30 = vmul.f32 -1.442695, %v596_v29  ;;  %v599_v33 = vpop.xlane.xlu0 %598 }
 0x1cc   :  { %v1463_v34 = vpop.eup %1462  ;;  %v1256_v36 = vmul.f32 -1.442695, %v599_v33 }
 0x1cd   :  { %v627_v37 = vadd.f32 1.0, %v1463_v34  ;;  %1472 = vpow2.f32 %v1255_v30  ;;  %v820_v30 = vrot.slane %v819_v6, 2 }
 0x1ce   :  { %1474 = vpow2.f32 %v1256_v36  ;;  %v602_v42 = vpop.xlane.xlu1 %601 }
 0x1cf   :  { %v1465_v43 = vpop.eup %1464  ;;  %1476 = vrcp.f32 %v627_v37  ;;  %v1257_v44 = vmul.f32 -1.442695, %v602_v42  ;;  %v1847_v60 = vadd.f32 %v820_v30, %v819_v6 }
 0x1d0   :  { %v1467_v45 = vpop.eup %1466  ;;  %v629_v46 = vadd.f32 1.0, %v1465_v43 }
 0x1d1   :  { %v628_v50 = vadd.f32 1.0, %v1467_v45  ;;  %1478 = vpow2.f32 %v1257_v44  ;;  %v827_v44 = vrot.slane %v826_v11, 2  ;;  %v834_v45 = vrot.slane %v833_v12, 2 }
 0x1d2   :  { %1480 = vrcp.f32 %v629_v46  ;;  %v841_v46 = vrot.slane %v840_v0, 2 }
 0x1d3   :  { %v1469_v51 = vpop.eup %1468  ;;  %1482 = vrcp.f32 %v628_v50  ;;  %v1851_v63 = vadd.f32 %v834_v45, %v833_v12 }
 0x1d4   :  { %v1471_v14 = vpop.eup %1470  ;;  %v630_v55 = vadd.f32 1.0, %v1469_v51 }
 0x1d5   :  { %v631_v19 = vadd.f32 1.0, %v1471_v14 }
 0x1d6   :  { %1484 = vrcp.f32 %v630_v55 }
 0x1d7   :  { %v1473_v61 = vpop.eup %1472  ;;  %1486 = vrcp.f32 %v631_v19 }
 0x1d8   :  { %v1475_v1 = vpop.eup %1474  ;;  %v632_v9 = vadd.f32 1.0, %v1473_v61  ;;  %v1849_v61 = vadd.f32 %v827_v44, %v826_v11 }
 0x1d9   :  { %v1477_v3 = vpop.eup %1476  ;;  %v633_v24 = vadd.f32 1.0, %v1475_v1 }
 0x1da   :  { %v651_v22 = vmul.f32 %v1477_v3, %v1774_v7  ;;  %v715_v8 = vrot.slane %v1477_v3, 4  ;;  %v1837_v7 = vadd.f32 %v813_v21, %v812_v58  ;;  %1488 = vrcp.f32 %v632_v9 }
 0x1db   :  { %v1479_v10 = vpop.eup %1478  ;;  %1490 = vrcp.f32 %v633_v24  ;;  %v1856_v9 = vadd.f32 %v846_v48, %v845_v13  ;;  %v1859_v24 = vadd.f32 %v853_v49, %v852_v15 }
 0x1dc   :  { %v1481_v4 = vpop.eup %1480  ;;  %v716_v20 = vadd.f32 %v1477_v3, %v715_v8  ;;  %v659_v28 = vsel %vm82_vm1, %v651_v22, 0.0  ;;  %v634_v43 = vadd.f32 1.0, %v1479_v10  ;;  %v815_v59 = vrot.slane %v1837_v7, 1 }
 0x1dd   :  { %v1483_v23 = vpop.eup %1482  ;;  %v727_v29 = vrot.slane %v1481_v4, 4  ;;  %v653_v25 = vmul.f32 %v1481_v4, %v1783_v32  ;;  %v660_v39 = vrot.slane %v659_v28, 4  ;;  %v1854_v8 = vadd.f32 %v841_v46, %v840_v0 }
 0x1de   :  { %v652_v33 = vmul.f32 %v1483_v23, %v1780_v16  ;;  %v721_v34 = vrot.slane %v1483_v23, 4  ;;  %v717_v36 = vrot.slane %v716_v20, 2  ;;  %1492 = vrcp.f32 %v634_v43 }
 0x1df   :  { %v728_v37 = vadd.f32 %v1481_v4, %v727_v29  ;;  %v673_v14 = vsel %vm82_vm1, %v653_v25, 0.0  ;;  %v661_v55 = vadd.f32 %v660_v39, %v659_v28 }
 0x1e0   :  { %v1485_v26 = vpop.eup %1484  ;;  %v666_v40 = vsel %vm82_vm1, %v652_v33, 0.0  ;;  %v722_v42 = vadd.f32 %v1483_v23, %v721_v34  ;;  %v718_v53 = vadd.f32 %v717_v36, %v716_v20  ;;  %v674_v19 = vrot.slane %v673_v14, 4 }
 0x1e1   :  { %v729_v50 = vrot.slane %v728_v37, 2  ;;  %v733_v51 = vrot.slane %v1485_v26, 4  ;;  %v667_v32 = vrot.slane %v666_v40, 4  ;;  %v654_v17 = vmul.f32 %v1485_v26, %v1788_v35  ;;  %v1487_v58 = vpop.eup %1486 }
 0x1e2   :  { %v723_v16 = vrot.slane %v722_v42, 2  ;;  %v719_v3 = vrot.slane %v718_v53, 1  ;;  %v662_v6 = vrot.slane %v661_v55, 2  ;;  %v655_v10 = vmul.f32 %v1487_v58, %v1798_v47 }
 0x1e3   :  { %v734_v62 = vadd.f32 %v1485_v26, %v733_v51  ;;  %v730_v1 = vadd.f32 %v729_v50, %v728_v37  ;;  %v668_v35 = vadd.f32 %v667_v32, %v666_v40  ;;  %v680_v5 = vsel %vm82_vm1, %v654_v17, 0.0 }
 0x1e4   :  { %v724_v56 = vadd.f32 %v723_v16, %v722_v42  ;;  %v1489_v22 = vpop.eup %1488  ;;  %v739_v20 = vrot.slane %v1487_v58, 4  ;;  %v675_v23 = vadd.f32 %v674_v19, %v673_v14  ;;  %v681_v29 = vrot.slane %v680_v5, 4 }
 0x1e5   :  { %v735_v21 = vrot.slane %v734_v62, 2  ;;  %v1491_v11 = vpop.eup %1490  ;;  %v731_v28 = vrot.slane %v730_v1, 1  ;;  %v687_v30 = vsel %vm82_vm1, %v655_v10, 0.0  ;;  %v720_v33 = vadd.f32 %v719_v3, %v718_v53 }
 0x1e6   :  { %v725_v2 = vrot.slane %v724_v56, 1  ;;  %v669_v34 = vrot.slane %v668_v35, 2  ;;  %v740_v36 = vadd.f32 %v1487_v58, %v739_v20  ;;  %v1862_v13 = vadd.f32 %v662_v6, %v661_v55 }
 0x1e7   :  { %v736_v4 = vadd.f32 %v735_v21, %v734_v62  ;;  %v656_v25 = vmul.f32 %v1489_v22, %v1792_v41  ;;  %v745_v47 = vrot.slane %v1489_v22, 4  ;;  %v657_v15 = vmul.f32 %v1491_v11, %v1802_v52 }
 0x1e8   :  { %v726_v12 = vadd.f32 %v725_v2, %v724_v56  ;;  %v688_v37 = vrot.slane %v687_v30, 4  ;;  %v741_v26 = vrot.slane %v740_v36, 2  ;;  %v751_v39 = vrot.slane %v1491_v11, 4  ;;  %v1493_v40 = vpop.eup %1492 }
 0x1e9   :  { %v737_v0 = vrot.slane %v736_v4, 1  ;;  %v732_v42 = vadd.f32 %v731_v28, %v730_v1  ;;  %v682_v43 = vadd.f32 %v681_v29, %v680_v5  ;;  %v694_v44 = vsel %vm82_vm1, %v656_v25, 0.0 }
 0x1ea   :  { %1494 = vrcp.f32 %v726_v12  ;;  %v746_v45 = vadd.f32 %v1489_v22, %v745_v47  ;;  %v670_v46 = vadd.f32 %v669_v34, %v668_v35  ;;  %v742_v49 = vadd.f32 %v741_v26, %v740_v36 }
 0x1eb   :  { %1496 = vrcp.f32 %v720_v33  ;;  %v738_v48 = vadd.f32 %v737_v0, %v736_v4  ;;  %v695_v50 = vrot.slane %v694_v44, 4  ;;  %v701_v41 = vsel %vm82_vm1, %v657_v15, 0.0 }
 0x1ec   :  { %v747_v16 = vrot.slane %v746_v45, 2  ;;  %v752_v51 = vadd.f32 %v1491_v11, %v751_v39  ;;  %v676_v52 = vrot.slane %v675_v23, 2  ;;  %v689_v53 = vadd.f32 %v688_v37, %v687_v30 }
 0x1ed   :  { %v743_v14 = vrot.slane %v742_v49, 1  ;;  %v658_v32 = vmul.f32 %v1493_v40, %v1808_v57  ;;  %1498 = vrcp.f32 %v732_v42  ;;  %v683_v17 = vrot.slane %v682_v43, 2 }
 0x1ee   :  { %v748_v55 = vadd.f32 %v747_v16, %v746_v45  ;;  %v753_v56 = vrot.slane %v752_v51, 2  ;;  %v809_v58 = vadd.f32 %v808_v54, %v1835_v27  ;;  %1500 = vrcp.f32 %v738_v48 }
 0x1ef   :  { %v744_v62 = vadd.f32 %v743_v14, %v742_v49  ;;  %v702_v19 = vrot.slane %v701_v41, 4  ;;  %v671_v1 = vrot.slane %v670_v46, 1  ;;  %v696_v2 = vadd.f32 %v695_v50, %v694_v44 }
 0x1f0   :  { %v749_v3 = vrot.slane %v748_v55, 1  ;;  %v754_v35 = vadd.f32 %v753_v56, %v752_v51  ;;  %v664_v5 = vrot.slane %v1862_v13, 1  ;;  %v677_v21 = vadd.f32 %v676_v52, %v675_v23 }
 0x1f1   :  { %v690_v57 = vrot.slane %v689_v53, 2  ;;  %v708_v22 = vsel %vm82_vm1, %v658_v32, 0.0  ;;  %v684_v6 = vadd.f32 %v683_v17, %v682_v43  ;;  %1502 = vrcp.f32 %v744_v62 }
 0x1f2   :  { %v750_v10 = vadd.f32 %v749_v3, %v748_v55  ;;  %v755_v11 = vrot.slane %v754_v35, 1  ;;  %v816_v27 = vadd.f32 %v815_v59, %v1837_v7  ;;  %v822_v54 = vrot.slane %v1847_v60, 1 }
 0x1f3   :  { %v703_v4 = vadd.f32 %v702_v19, %v701_v41  ;;  %v757_v20 = vrot.slane %v1493_v40, 4  ;;  %v672_v28 = vadd.f32 %v671_v1, %v670_v46  ;;  %v697_v29 = vrot.slane %v696_v2, 2 }
 0x1f4   :  { %v1495_v12 = vpop.eup %1494  ;;  %v756_v23 = vadd.f32 %v755_v11, %v754_v35  ;;  %v709_v30 = vrot.slane %v708_v22, 4  ;;  %v678_v34 = vrot.slane %v677_v21, 1  ;;  %v691_v0 = vadd.f32 %v690_v57, %v689_v53 }
 0x1f5   :  { %v1497_v33 = vpop.eup %1496  ;;  %1504 = vrcp.f32 %v750_v10  ;;  %v758_v36 = vadd.f32 %v1493_v40, %v757_v20  ;;  %v829_v25 = vrot.slane %v1849_v61, 1  ;;  %v665_v47 = vadd.f32 %v664_v5, %v1862_v13 }
 0x1f6   :  { %v772_v15 = vmul.f32 %v1495_v12, %v672_v28  ;;  %v685_v7 = vrot.slane %v684_v6, 1  ;;  %v836_v59 = vrot.slane %v1851_v63, 1  ;;  %v848_v37 = vrot.slane %v1856_v9, 2 }
 0x1f7   :  { %v704_v26 = vrot.slane %v703_v4, 2  ;;  %v759_v39 = vrot.slane %v758_v36, 2  ;;  %v1499_v42 = vpop.eup %1498  ;;  %v771_v43 = vmul.f32 %v1497_v33, %v665_v47  ;;  %v698_v44 = vadd.f32 %v697_v29, %v696_v2 }
 0x1f8   :  { %1506 = vrcp.f32 %v756_v23  ;;  %v710_v45 = vadd.f32 %v709_v30, %v708_v22  ;;  %v1501_v46 = vpop.eup %1500  ;;  %v823_v40 = vadd.f32 %v822_v54, %v1847_v60  ;;  %v679_v48 = vadd.f32 %v678_v34, %v677_v21 }
 0x1f9   :  { %v692_v49 = vrot.slane %v691_v0, 1  ;;  %v760_v50 = vadd.f32 %v759_v39, %v758_v36  ;;  %v867_v13 = vsel %vm787_vm2, %v816_v27, %v809_v58  ;;  %v855_v16 = vrot.slane %v1859_v24, 2 }
 0x1fa   :  { %v788_v41 = vsel %vm787_vm2, %v772_v15, %v771_v43  ;;  %v686_v51 = vadd.f32 %v685_v7, %v684_v6  ;;  %v830_v52 = vadd.f32 %v829_v25, %v1849_v61  ;;  %v773_v53 = vmul.f32 %v1499_v42, %v679_v48 }
 0x1fb   :  { %v705_v14 = vadd.f32 %v704_v26, %v703_v4  ;;  %v761_v32 = vrot.slane %v760_v50, 1  ;;  %v1503_v17 = vpop.eup %1502  ;;  %v849_v55 = vadd.f32 %v848_v37, %v1856_v9  ;;  %v699_v60 = vrot.slane %v698_v44, 1 }
 0x1fc   :  { %v774_v56 = vmul.f32 %v1501_v46, %v686_v51  ;;  %v711_v62 = vrot.slane %v710_v45, 2  ;;  %v868_v19 = vsel %vm789_vm3, %v823_v40, %v867_v13  ;;  %v790_v58 = vsel %vm789_vm3, %v773_v53, %v788_v41 }
 0x1fd   :  { %v693_v1 = vadd.f32 %v692_v49, %v691_v0  ;;  %v762_v2 = vadd.f32 %v761_v32, %v760_v50  ;;  %v837_v3 = vadd.f32 %v836_v59, %v1851_v63  ;;  %v843_v61 = vrot.slane %v1854_v8, 1 }
 0x1fe   :  { %v856_v5 = vadd.f32 %v855_v16, %v1859_v24  ;;  %v706_v57 = vrot.slane %v705_v14, 1  ;;  %v869_v9 = vsel %vm791_vm4, %v830_v52, %v868_v19  ;;  %v792_v22 = vsel %vm791_vm4, %v774_v56, %v790_v58 }
 0x1ff   :  { %v1505_v35 = vpop.eup %1504  ;;  %v775_v21 = vmul.f32 %v1503_v17, %v693_v1  ;;  %1508 = vrcp.f32 %v762_v2  ;;  %v700_v6 = vadd.f32 %v699_v60, %v698_v44  ;;  %v712_v10 = vadd.f32 %v711_v62, %v710_v45 }
 0x200   :  { %v850_v11 = vrot.slane %v849_v55, 1  ;;  %v844_v27 = vadd.f32 %v843_v61, %v1854_v8  ;;  %v870_v63 = vsel %vm793_vm5, %v837_v3, %v869_v9  ;;  %v707_v24 = vadd.f32 %v706_v57, %v705_v14  ;;  %v1275_v3 = vld [vmem:[#allocation5] sm:$0xff]   ;;  %v1342_v61 = vld [vmem:[#allocation5 + $0x10] sm:$0xff]  }
 0x201   :  { %v776_v54 = vmul.f32 %v1505_v35, %v700_v6  ;;  %v794_v4 = vsel %vm793_vm5, %v775_v21, %v792_v22  ;;  %v857_v20 = vrot.slane %v856_v5, 1  ;;  %v713_v28 = vrot.slane %v712_v10, 1  ;;  %v1344_v35 = vld [vmem:[#allocation5 + $0x20] sm:$0xff]   ;;  %v1346_v6 = vld [vmem:[#allocation5 + $0x30] sm:$0xff]  }
 0x202   :  { %v1507_v12 = vpop.eup %1506  ;;  %v851_v29 = vadd.f32 %v850_v11, %v849_v55  ;;  %v871_v30 = vsel %vm795_vm6, %v844_v27, %v870_v63  ;;  %v962_v39 = vsub.s32 1, %v1730_v31  ;;  %v981_v42 = vsub.s32 2, %v1730_v31  ;;  %v1345_v11 = vld [vmem:[#allocation5 + $0x28] sm:$0xff]   ;;  %v1348_v27 = vld [vmem:[#allocation5 + $0x40] sm:$0xff]  }
 0x203   :  { %v777_v23 = vmul.f32 %v1507_v12, %v707_v24  ;;  %v796_v33 = vsel %vm795_vm6, %v776_v54, %v794_v4  ;;  %v858_v34 = vadd.f32 %v857_v20, %v856_v5  ;;  %v714_v0 = vadd.f32 %v713_v28, %v712_v10  ;;  %v1341_v5 = vld [vmem:[#allocation5 + $0x8] sm:$0xff]   ;;  %v1343_v10 = vld [vmem:[#allocation5 + $0x18] sm:$0xff]   ;;  %v1350_v20 = vld [vmem:[#allocation5 + $0x50] sm:$0xff]  }
 0x204   :  { %v872_v8 = vsel %vm797_vm7, %v851_v29, %v871_v30  ;;  %v1000_v45 = vsub.s32 3, %v1730_v31  ;;  %v1038_v40 = vsub.s32 5, %v1730_v31  ;;  %v1057_v49 = vsub.s32 6, %v1730_v31  ;;  %v1347_v28 = vld [vmem:[#allocation5 + $0x38] sm:$0xff]  }
 0x205   :  { %v798_v25 = vsel %vm797_vm7, %v777_v23, %v796_v33  ;;  %v873_v15 = vsel %vm799_vm8, %v858_v34, %v872_v8  ;;  %v1076_v13 = vsub.s32 7, %v1730_v31  ;;  %v1277_v9 = vunpack.c.h.bf16 %v1275_v3 }
 0x206   :  { %v1276_v22 = vunpack.c.l.bf16 %v1275_v3  ;;  %v1284_v12 = vunpack.c.l.bf16 %v1342_v61  ;;  %v1292_v54 = vunpack.c.l.bf16 %v1344_v35  ;;  %v1285_v63 = vunpack.c.h.bf16 %v1342_v61 }
 0x207   :  { %v1280_v4 = vunpack.c.l.bf16 %v1341_v5  ;;  %v1293_v24 = vunpack.c.h.bf16 %v1344_v35  ;;  %v1300_v29 = vunpack.c.l.bf16 %v1346_v6  ;;  %v1288_v23 = vunpack.c.l.bf16 %v1343_v10 }
 0x208   :  { %v1296_v30 = vunpack.c.l.bf16 %v1345_v11  ;;  %v1301_v33 = vunpack.c.h.bf16 %v1346_v6 }
 0x209   :  { %v1509_v36 = vpop.eup %1508 }
 0x20a   :  { %v778_v47 = vmul.f32 %v1509_v36, %v714_v0  ;;  %v1349_v36 = vld [vmem:[#allocation5 + $0x48] sm:$0xff]  }
 0x20c   :  { %v800_v7 = vsel %vm799_vm8, %v778_v47, %v798_v25  ;;  %v1309_v47 = vunpack.c.h.bf16 %v1348_v27 }
 0x20d   :  { %v802_v59 = vadd.f32 %v800_v7, %v1694_v18  ;;  %v1019_v18 = vsub.s32 4, %v1730_v31  ;;  %v1921_v7 = vld [vmem:[#allocation5 + $0x58] sm:$0xff]  }
 0x20f   :  { %v875_v37 = vadd.f32 %v873_v15, %v802_v59  ;;  %v1308_v15 = vunpack.c.l.bf16 %v1348_v27  ;;  %v1289_v59 = vunpack.c.h.bf16 %v1343_v10 }
 0x211   :  { %v944_v26 = vrot.slane %v875_v37, %v1737_v38  ;;  %v963_v43 = vrot.slane %v875_v37, %v962_v39  ;;  %v982_v44 = vrot.slane %v875_v37, %v981_v42  ;;  %v1001_v46 = vrot.slane %v875_v37, %v1000_v45 }
 0x212   :  { %v1020_v38 = vrot.slane %v875_v37, %v1019_v18  ;;  %v1039_v48 = vrot.slane %v875_v37, %v1038_v40  ;;  %v1058_v50 = vrot.slane %v875_v37, %v1057_v49  ;;  %v1077_v16 = vrot.slane %v875_v37, %v1076_v13 }
 0x213   :  { %950 = vbcast.lane.b32.xlu1 %v944_v26, 264  ;;  %946 = vbcast.lane.b32.xlu0 %v944_v26, 256  ;;  %v1281_v37 = vunpack.c.h.bf16 %v1341_v5  ;;  %v1304_v39 = vunpack.c.l.bf16 %v1347_v28  ;;  %v1312_v45 = vunpack.c.l.bf16 %v1349_v36  ;;  %v1305_v40 = vunpack.c.h.bf16 %v1347_v28 }
 0x214   :  { %v1320_v49 = vunpack.c.l.bf16 %v1921_v7  ;;  %v1321_v28 = vunpack.c.h.bf16 %v1921_v7  ;;  %v1355_v7 = vld [vmem:[#allocation5 + $0x78] sm:$0xff]  }
 0x217   :  { %965 = vbcast.lane.b32.xlu1 %v963_v43, 256  ;;  %984 = vbcast.lane.b32.xlu0 %v982_v44, 256 }
 0x21b   :  { %969 = vbcast.lane.b32.xlu1 %v963_v43, 264  ;;  %954 = vbcast.lane.b32.xlu0 %v944_v26, 272 }
 0x21f   :  { %988 = vbcast.lane.b32.xlu1 %v982_v44, 264  ;;  %1003 = vbcast.lane.b32.xlu0 %v1001_v46, 256 }
 0x223   :  { %973 = vbcast.lane.b32.xlu1 %v963_v43, 272  ;;  %992 = vbcast.lane.b32.xlu0 %v982_v44, 272 }
 0x227   :  { %1007 = vbcast.lane.b32.xlu1 %v1001_v46, 264  ;;  %1026 = vbcast.lane.b32.xlu0 %v1020_v38, 264 }
 0x22b   :  { %1022 = vbcast.lane.b32.xlu1 %v1020_v38, 256  ;;  %977 = vbcast.lane.b32.xlu0 %v963_v43, 280  ;;  %v1297_v43 = vunpack.c.h.bf16 %v1345_v11 }
 0x22f   :  { %958 = vbcast.lane.b32.xlu1 %v944_v26, 280  ;;  %1041 = vbcast.lane.b32.xlu0 %v1039_v48, 256  ;;  %v1316_v26 = vunpack.c.l.bf16 %v1350_v20 }
 0x233   :  { %1011 = vbcast.lane.b32.xlu1 %v1001_v46, 272  ;;  %996 = vbcast.lane.b32.xlu0 %v982_v44, 280  ;;  %v1317_v44 = vunpack.c.h.bf16 %v1350_v20 }
 0x237   :  { %1045 = vbcast.lane.b32.xlu1 %v1039_v48, 264  ;;  %1060 = vbcast.lane.b32.xlu0 %v1058_v50, 256 }
 0x23b   :  { %1030 = vbcast.lane.b32.xlu1 %v1020_v38, 272  ;;  %1015 = vbcast.lane.b32.xlu0 %v1001_v46, 280 }
 0x23f   :  { %1064 = vbcast.lane.b32.xlu1 %v1058_v50, 264  ;;  %1079 = vbcast.lane.b32.xlu0 %v1077_v16, 256 }
 0x243   :  { %1049 = vbcast.lane.b32.xlu1 %v1039_v48, 272  ;;  %1034 = vbcast.lane.b32.xlu0 %v1020_v38, 280 }
 0x247   :  { %1083 = vbcast.lane.b32.xlu1 %v1077_v16, 264  ;;  %1053 = vbcast.lane.b32.xlu0 %v1039_v48, 280 }
 0x24b   :  { %1068 = vbcast.lane.b32.xlu1 %v1058_v50, 272  ;;  %1072 = vbcast.lane.b32.xlu0 %v1058_v50, 280 }
 0x24f   :  { %1087 = vbcast.lane.b32.xlu1 %v1077_v16, 272 }
 0x253   :  { %1091 = vbcast.lane.b32.xlu1 %v1077_v16, 280 }
 0x285   :  { %v951_v41 = vpop.permute.xlu1 %950  ;;  %v947_v51 = vpop.permute.xlu0 %946 }
 0x286   :  { %v1094_v8 = vmul.f32 %v1277_v9, %v951_v41  ;;  %v1093_v25 = vmul.f32 %v1276_v22, %v947_v51  ;;  %v1313_v41 = vunpack.c.h.bf16 %v1349_v36 }
 0x288   :  { %v1125_v50 = vadd.f32 %v1094_v8, %v1093_v25 }
 0x289   :  { %v966_v52 = vpop.permute.xlu1 %965  ;;  %v985_v53 = vpop.permute.xlu0 %984 }
 0x28a   :  { %v1097_v13 = vmul.f32 %v1284_v12, %v966_v52  ;;  %v1101_v51 = vmul.f32 %v1292_v54, %v985_v53  ;;  %v1352_v12 = vld [vmem:[#allocation5 + $0x60] sm:$0xff]  }
 0x28b   :  { %v1324_v25 = vunpack.c.l.bf16 %v1352_v12 }
 0x28d   :  { %v970_v14 = vpop.permute.xlu1 %969  ;;  %v955_v32 = vpop.permute.xlu0 %954 }
 0x28e   :  { %v1098_v42 = vmul.f32 %v1285_v63, %v970_v14  ;;  %v1095_v46 = vmul.f32 %v1280_v4, %v955_v32 }
 0x290   :  { %v1134_v5 = vadd.f32 %v1098_v42, %v1097_v13  ;;  %v1126_v32 = vadd.f32 %v1125_v50, %v1095_v46  ;;  %v1354_v42 = vld [vmem:[#allocation5 + $0x70] sm:$0xff]  }
 0x291   :  { %v989_v31 = vpop.permute.xlu1 %988  ;;  %v1913_v17 = vpop.permute.xlu0 %1003  ;;  %v1332_v13 = vunpack.c.l.bf16 %v1354_v42 }
 0x292   :  { %v1102_v18 = vmul.f32 %v1293_v24, %v989_v31  ;;  %v1105_v14 = vmul.f32 %v1300_v29, %v1913_v17 }
 0x294   :  { %v1143_v31 = vadd.f32 %v1102_v18, %v1101_v51  ;;  %v1336_v51 = vunpack.c.l.bf16 %v1355_v7 }
 0x295   :  { %v974_v55 = vpop.permute.xlu1 %973  ;;  %v993_v56 = vpop.permute.xlu0 %992 }
 0x296   :  { %v1099_v3 = vmul.f32 %v1288_v23, %v974_v55  ;;  %v1103_v61 = vmul.f32 %v1296_v30, %v993_v56 }
 0x298   :  { %v1135_v55 = vadd.f32 %v1134_v5, %v1099_v3  ;;  %v1144_v56 = vadd.f32 %v1143_v31, %v1103_v61 }
 0x299   :  { %v1008_v60 = vpop.permute.xlu1 %1007  ;;  %v1915_v62 = vpop.permute.xlu0 %1026 }
 0x29a   :  { %v1106_v16 = vmul.f32 %v1301_v33, %v1008_v60  ;;  %v1110_v52 = vmul.f32 %v1309_v47, %v1915_v62  ;;  %v1353_v33 = vld [vmem:[#allocation5 + $0x68] sm:$0xff]  }
 0x29c   :  { %v1152_v63 = vadd.f32 %v1106_v16, %v1105_v14 }
 0x29d   :  { %v1023_v19 = vpop.permute.xlu1 %1022  ;;  %v978_v58 = vpop.permute.xlu0 %977 }
 0x29e   :  { %v1109_v9 = vmul.f32 %v1308_v15, %v1023_v19  ;;  %v1100_v6 = vmul.f32 %v1289_v59, %v978_v58 }
 0x2a0   :  { %v1161_v54 = vadd.f32 %v1110_v52, %v1109_v9  ;;  %v1136_v4 = vadd.f32 %v1135_v55, %v1100_v6 }
 0x2a1   :  { %v959_v1 = vpop.permute.xlu1 %958  ;;  %v1917_v2 = vpop.permute.xlu0 %1041 }
 0x2a2   :  { %v1096_v35 = vmul.f32 %v1281_v37, %v959_v1  ;;  %v1113_v58 = vmul.f32 %v1316_v26, %v1917_v2  ;;  %v1137_v15 = vrot.slane %v1136_v4, 4 }
 0x2a4   :  { %v1127_v1 = vadd.f32 %v1126_v32, %v1096_v35 }
 0x2a5   :  { %v1012_v21 = vpop.permute.xlu1 %1011  ;;  %v997_v57 = vpop.permute.xlu0 %996 }
 0x2a6   :  { %v1107_v22 = vmul.f32 %v1304_v39, %v1012_v21  ;;  %v1104_v10 = vmul.f32 %v1297_v43, %v997_v57  ;;  %v1325_v21 = vunpack.c.h.bf16 %v1352_v12  ;;  %v1128_v36 = vrot.slane %v1127_v1, 4 }
 0x2a7   :  { %v1328_v39 = vunpack.c.l.bf16 %v1353_v33 }
 0x2a8   :  { %v1153_v17 = vadd.f32 %v1152_v63, %v1107_v22  ;;  %v1145_v57 = vadd.f32 %v1144_v56, %v1104_v10  ;;  %v1337_v63 = vunpack.c.h.bf16 %v1355_v7 }
 0x2a9   :  { %v1046_v34 = vpop.permute.xlu1 %1045  ;;  %v1919_v0 = vpop.permute.xlu0 %1060 }
 0x2aa   :  { %v1114_v19 = vmul.f32 %v1317_v44, %v1046_v34  ;;  %v1146_v34 = vrot.slane %v1145_v57, 4  ;;  %v1117_v18 = vmul.f32 %v1324_v25, %v1919_v0 }
 0x2ac   :  { %v1170_v8 = vadd.f32 %v1114_v19, %v1113_v58  ;;  %v1147_v50 = vadd.f32 %v1146_v34, %v1145_v57 }
 0x2ad   :  { %v1031_v38 = vpop.permute.xlu1 %1030  ;;  %v1016_v48 = vpop.permute.xlu0 %1015 }
 0x2ae   :  { %v1111_v60 = vmul.f32 %v1312_v45, %v1031_v38  ;;  %v1108_v53 = vmul.f32 %v1305_v40, %v1016_v48  ;;  %v1129_v45 = vadd.f32 %v1128_v36, %v1127_v1  ;;  %v1333_v38 = vunpack.c.h.bf16 %v1354_v42 }
 0x2af   :  { %v1329_v48 = vunpack.c.h.bf16 %v1353_v33  ;;  %v1148_v10 = vrot.slane %v1147_v50, 2 }
 0x2b0   :  { %v1162_v29 = vadd.f32 %v1161_v54, %v1111_v60  ;;  %v1154_v62 = vadd.f32 %v1153_v17, %v1108_v53  ;;  %v1130_v14 = vrot.slane %v1129_v45, 2 }
 0x2b1   :  { %v1065_v11 = vpop.permute.xlu1 %1064  ;;  %v1925_v27 = vpop.permute.xlu0 %1079 }
 0x2b2   :  { %v1155_v2 = vrot.slane %v1154_v62, 4  ;;  %v1118_v26 = vmul.f32 %v1325_v21, %v1065_v11  ;;  %v1121_v60 = vmul.f32 %v1332_v13, %v1925_v27  ;;  %v1131_v1 = vadd.f32 %v1130_v14, %v1129_v45 }
 0x2b3   :  { %v1149_v21 = vadd.f32 %v1148_v10, %v1147_v50  ;;  %v940_v50 = vld [vmem:[%s1962_s8] sm:$0xff] }
 0x2b4   :  { %v1156_v3 = vadd.f32 %v1155_v2, %v1154_v62  ;;  %v1179_v61 = vadd.f32 %v1118_v26, %v1117_v18 }
 0x2b5   :  { %v1050_v24 = vpop.permute.xlu1 %1049  ;;  %v1035_v20 = vpop.permute.xlu0 %1034  ;;  %v1150_v27 = vrot.slane %v1149_v21, 1 }
 0x2b6   :  { %v1115_v23 = vmul.f32 %v1320_v49, %v1050_v24  ;;  %v1112_v30 = vmul.f32 %v1313_v41, %v1035_v20  ;;  %v1138_v49 = vadd.f32 %v1137_v15, %v1136_v4  ;;  %v1157_v52 = vrot.slane %v1156_v3, 2 }
 0x2b8   :  { %v1163_v47 = vadd.f32 %v1162_v29, %v1112_v30  ;;  %v1171_v43 = vadd.f32 %v1170_v8, %v1115_v23  ;;  %v1139_v0 = vrot.slane %v1138_v49, 2  ;;  %v1158_v58 = vadd.f32 %v1157_v52, %v1156_v3 }
 0x2b9   :  { %v1084_v59 = vpop.permute.xlu1 %1083  ;;  %v1054_v37 = vpop.permute.xlu0 %1053  ;;  %v1132_v29 = vrot.slane %v1131_v1, 1 }
 0x2ba   :  { %v1116_v44 = vmul.f32 %v1321_v28, %v1054_v37  ;;  %v1164_v46 = vrot.slane %v1163_v47, 4  ;;  %v1122_v22 = vmul.f32 %v1333_v38, %v1084_v59  ;;  %v1140_v19 = vadd.f32 %v1139_v0, %v1138_v49 }
 0x2bb   :  { %v1159_v36 = vrot.slane %v1158_v58, 1  ;;  %v1133_v15 = vadd.f32 %v1132_v29, %v1131_v1  ;;  %v1151_v37 = vadd.f32 %v1150_v27, %v1149_v21 }
 0x2bc   :  { %v1172_v40 = vadd.f32 %v1171_v43, %v1116_v44  ;;  %v1165_v9 = vadd.f32 %v1164_v46, %v1163_v47  ;;  %v1188_v12 = vadd.f32 %v1122_v22, %v1121_v60  ;;  %v1141_v33 = vrot.slane %v1140_v19, 1 }
 0x2bd   :  { %v1069_v16 = vpop.permute.xlu1 %1068  ;;  %v1073_v41 = vpop.permute.xlu0 %1072  ;;  %v1160_v26 = vadd.f32 %v1159_v36, %v1158_v58 }
 0x2be   :  { %v1173_v35 = vrot.slane %v1172_v40, 4  ;;  %v1119_v5 = vmul.f32 %v1328_v39, %v1069_v16  ;;  %v1120_v6 = vmul.f32 %v1329_v48, %v1073_v41  ;;  %v1166_v56 = vrot.slane %v1165_v9, 2 }
 0x2bf   :  { %v1142_v2 = vadd.f32 %v1141_v33, %v1140_v19 }
 0x2c0   :  { %v1174_v32 = vadd.f32 %v1173_v35, %v1172_v40  ;;  %v1180_v31 = vadd.f32 %v1179_v61, %v1119_v5  ;;  %v1167_v28 = vadd.f32 %v1166_v56, %v1165_v9 }
 0x2c1   :  { %v1088_v11 = vpop.permute.xlu1 %1087  ;;  %v1205_v44 = vsel %vm787_vm2, %v1142_v2, %v1133_v15 }
 0x2c2   :  { %v1181_v53 = vadd.f32 %v1180_v31, %v1120_v6  ;;  %v1123_v55 = vmul.f32 %v1336_v51, %v1088_v11  ;;  %v1175_v54 = vrot.slane %v1174_v32, 2  ;;  %v1168_v47 = vrot.slane %v1167_v28, 1 }
 0x2c3   :  { %v1206_v46 = vsel %vm789_vm3, %v1151_v37, %v1205_v44 }
 0x2c4   :  { %v1182_v17 = vrot.slane %v1181_v53, 4  ;;  %v1189_v24 = vadd.f32 %v1188_v12, %v1123_v55  ;;  %v1176_v62 = vadd.f32 %v1175_v54, %v1174_v32  ;;  %v1169_v43 = vadd.f32 %v1168_v47, %v1167_v28 }
 0x2c5   :  { %v1092_v4 = vpop.permute.xlu1 %1091  ;;  %v1207_v38 = vsel %vm791_vm4, %v1160_v26, %v1206_v46 }
 0x2c6   :  { %v1183_v57 = vadd.f32 %v1182_v17, %v1181_v53  ;;  %v1124_v20 = vmul.f32 %v1337_v63, %v1092_v4  ;;  %v1177_v34 = vrot.slane %v1176_v62, 1  ;;  %v1208_v48 = vsel %vm793_vm5, %v1169_v43, %v1207_v38 }
 0x2c8   :  { %v1184_v23 = vrot.slane %v1183_v57, 2  ;;  %v1190_v30 = vadd.f32 %v1189_v24, %v1124_v20  ;;  %v1178_v7 = vadd.f32 %v1177_v34, %v1176_v62 }
 0x2ca   :  { %v1185_v8 = vadd.f32 %v1184_v23, %v1183_v57  ;;  %v1191_v25 = vrot.slane %v1190_v30, 4  ;;  %v1209_v13 = vsel %vm795_vm6, %v1178_v7, %v1208_v48 }
 0x2cc   :  { %v1192_v59 = vadd.f32 %v1191_v25, %v1190_v30  ;;  %v1186_v39 = vrot.slane %v1185_v8, 1 }
 0x2ce   :  { %v1193_v42 = vrot.slane %v1192_v59, 2  ;;  %v1187_v18 = vadd.f32 %v1186_v39, %v1185_v8 }
 0x2d0   :  { %v1194_v45 = vadd.f32 %v1193_v42, %v1192_v59  ;;  %v1210_v16 = vsel %vm797_vm7, %v1187_v18, %v1209_v13 }
 0x2d2   :  { %v1195_v40 = vrot.slane %v1194_v45, 1 }
 0x2d4   :  { %v1196_v49 = vadd.f32 %v1195_v40, %v1194_v45 }
 0x2d6   :  { %v1211_v41 = vsel %vm799_vm8, %v1196_v49, %v1210_v16 }
 0x2d7   :  { %v1213_v51 = vadd.f32 %v1211_v41, %v940_v50 }
 0x2d9   :  { %1214 = vst [vmem:[#allocation7] sm:$0xff] %v1213_v51 }
 0x2da   :  { %1565 = shalt.err (!%p1562_p6)
}
 0x2db   :  { %s1566_s16 = scalar_lea.hbm %s1963_s9, 128 }
 0x2dc   :  { %p1567_p7 = scmp.ne.s32.totalorder %s1963_s9, %s1566_s16  ;;  %p1570_p8 = scmp.lt.u32.totalorder %s1566_s16, %s1963_s9 }
 0x2de   :  { %p1572_p9 = pnand %p1570_p8, %p1567_p7 }
 0x2e0   :  { %1575 = shalt.err (!%p1572_p9)
}
 0x2e1   :  { %1224 = dma.vmem_to_hbm [thread:$0]  %s1222_s13, 128, %s1963_s9, [#allocation4]  }
 0x2e2   :  { %1580 = dma.done.wait [#allocation4], 128  }
 0x2e3   :  { %1581 = vsyncadd [#allocation4], 4294967168 }
 0x2e4   :  { %1228 = vsyncpa [#allocation3], 1 }
 0x2e5   :  { %1229 = vsyncpa [#allocation6], 1 }
 0x2e6   :  { %1230 = vsyncpa [#allocation4], 1 }

</bundles_post_ra>
